<compile_context>
chip_gen: v7x
topology: tpu7x:2x2x1
jax: 0.10.0
libtpu: 0.0.40
codegen_flags: <defaults>
</compile_context>

<pallas_src>
import math
import jax
import jax.numpy as jnp
from jax import lax
from jax.experimental import pallas as pl
from jax.experimental.pallas import tpu as pltpu


def pienet_kernel(prev_out_ref, x_ref, mask_ref,
                  w1t_ref, w2t_ref, wfct_ref, bfc_ref, gamma_ref, beta_ref,
                  newout_ref, attn_ref, resid_ref):
    # prev_out_ref : (TB, d_out)
    # x_ref        : (TB, L, d_in)
    # mask_ref     : (TB, L)            1.0 -> masked (pad), 0.0 -> valid
    # w1t_ref      : (d_in, d_h)        (w_1.weight.T)
    # w2t_ref      : (d_h, n_head)      (w_2.weight.T)
    # wfct_ref     : (d_in, d_out)      (fc.weight.T)
    # bfc_ref      : (1, d_out)
    # gamma_ref    : (1, d_out)   beta_ref : (1, d_out)
    # newout_ref   : (TB, n_head, d_out)
    # attn_ref     : (TB, L, n_head)
    # resid_ref    : (TB, n_head, d_out)
    TB, L, d_in = x_ref.shape
    d_h = w1t_ref.shape[1]
    n_head = w2t_ref.shape[1]
    d_out = wfct_ref.shape[1]

    x = x_ref[...]                                                   # (TB, L, d_in)
    x2 = x.reshape(TB * L, d_in)

    # --- MultiHeadSelfAttention ---
    h = jnp.tanh(jnp.dot(x2, w1t_ref[...],
                         preferred_element_type=jnp.float32))        # (TB*L, d_h)
    a = jnp.dot(h, w2t_ref[...],
                preferred_element_type=jnp.float32)                  # (TB*L, n_head)
    a = a.reshape(TB, L, n_head)

    mask = mask_ref[...]                                             # (TB, L)
    # large finite negative instead of -inf (avoids NaN for fully-padded rows)
    a = jnp.where(mask[:, :, None] > 0.5, jnp.float32(-1e30), a)

    # softmax over the sequence dimension (torch dim=1)
    a_max = jnp.max(a, axis=1, keepdims=True)
    p = jnp.exp(a - a_max)
    attn = p / jnp.sum(p, axis=1, keepdims=True)                     # (TB, L, n_head)
    attn_ref[...] = attn

    # output = bmm(attn.transpose(1,2), x)  -> (TB, n_head, d_in)
    pooled = jnp.einsum('blh,bld->bhd', attn, x,
                        preferred_element_type=jnp.float32)

    # --- PIENet head: residual = sigmoid(fc(pooled)); dropout p=0 -> identity ---
    pooled2 = pooled.reshape(TB * n_head, d_in)
    res = jax.nn.sigmoid(
        jnp.dot(pooled2, wfct_ref[...], preferred_element_type=jnp.float32)
        + bfc_ref[...])                                              # (TB*n_head, d_out)
    res = res.reshape(TB, n_head, d_out)
    resid_ref[...] = res

    # out.unsqueeze(1).repeat(1, n_embeds, 1) + residual (broadcast add)
    y = prev_out_ref[...][:, None, :] + res                          # (TB, n_head, d_out)

    # LayerNorm over last dim (eps=1e-5, biased variance)
    mean = jnp.mean(y, axis=-1, keepdims=True)
    var = jnp.mean((y - mean) ** 2, axis=-1, keepdims=True)
    yn = (y - mean) * lax.rsqrt(var + 1e-5)
    newout_ref[...] = yn * gamma_ref[...] + beta_ref[...]


def pienet_forward(out, x, pad_mask, params, *, batch_block=16):
    """out: (B, d_out) f32, x: (B, L, d_in) f32, pad_mask: (B, L) f32 (1=pad)."""
    B, L, d_in = x.shape
    d_out = out.shape[-1]
    w1t, w2t, wfct, bfc, gamma, beta = params
    d_h = w1t.shape[1]
    n_head = w2t.shape[1]

    # Process TB batch elements per grid step; pad B up to a multiple of TB.
    TB = min(batch_block, B)
    n_blocks = pl.cdiv(B, TB)
    B_pad = n_blocks * TB
    if B_pad != B:
        pad = B_pad - B
        out = jnp.pad(out, ((0, pad), (0, 0)))
        x = jnp.pad(x, ((0, pad), (0, 0), (0, 0)))
        pad_mask = jnp.pad(pad_mask, ((0, pad), (0, 0)))

    bfc2 = bfc.reshape(1, d_out)
    gamma2 = gamma.reshape(1, d_out)
    beta2 = beta.reshape(1, d_out)

    full = lambda shape: pl.BlockSpec(shape, lambda b: (0,) * len(shape))

    flops = 2 * B_pad * (L * d_in * d_h + L * d_h * n_head
                         + n_head * L * d_in + n_head * d_in * d_out)
    transcendentals = B_pad * (L * d_h + L * n_head + n_head * d_out)
    bytes_accessed = 4 * (B_pad * (d_out + L * d_in + L
                                   + 2 * n_head * d_out + L * n_head)
                          + d_in * d_h + d_h * n_head + d_in * d_out + 3 * d_out)

    grid_spec = pltpu.PrefetchScalarGridSpec(
        num_scalar_prefetch=0,
        grid=(n_blocks,),
        in_specs=[
            pl.BlockSpec((TB, d_out), lambda b: (b, 0)),          # out
            pl.BlockSpec((TB, L, d_in), lambda b: (b, 0, 0)),     # x
            pl.BlockSpec((TB, L), lambda b: (b, 0)),              # pad_mask
            full((d_in, d_h)),                                    # w1^T
            full((d_h, n_head)),                                  # w2^T
            full((d_in, d_out)),                                  # fc.weight^T
            full((1, d_out)),                                     # fc.bias
            full((1, d_out)),                                     # ln gamma
            full((1, d_out)),                                     # ln beta
        ],
        out_specs=[
            pl.BlockSpec((TB, n_head, d_out), lambda b: (b, 0, 0)),  # new out
            pl.BlockSpec((TB, L, n_head), lambda b: (b, 0, 0)),      # attn
            pl.BlockSpec((TB, n_head, d_out), lambda b: (b, 0, 0)),  # residual
        ],
    )

    new_out, attn, resid = pl.pallas_call(
        pienet_kernel,
        grid_spec=grid_spec,
        out_shape=(
            jax.ShapeDtypeStruct((B_pad, n_head, d_out), jnp.float32),
            jax.ShapeDtypeStruct((B_pad, L, n_head), jnp.float32),
            jax.ShapeDtypeStruct((B_pad, n_head, d_out), jnp.float32),
        ),
        compiler_params=pltpu.CompilerParams(
            dimension_semantics=("parallel",)),
        cost_estimate=pl.CostEstimate(flops=flops,
                                      transcendentals=transcendentals,
                                      bytes_accessed=bytes_accessed),
    )(out, x, pad_mask, w1t, w2t, wfct, bfc2, gamma2, beta2)

    if B_pad != B:
        new_out = new_out[:B]
        attn = attn[:B]
        resid = resid[:B]
    return new_out, attn, resid


def xavier_uniform(key, shape):
    # shape = (fan_out, fan_in) as in torch Linear weights
    fan_out, fan_in = shape
    bound = math.sqrt(6.0 / (fan_in + fan_out))
    return jax.random.uniform(key, shape, jnp.float32, -bound, bound)


def pienet_reference(out, x, pad_mask, params):
    """Pure-JAX reference mirroring the PyTorch forward."""
    w1t, w2t, wfct, bfc, gamma, beta = params
    attn = jnp.dot(jnp.tanh(jnp.dot(x, w1t)), w2t)            # (B, L, n_head)
    attn = jnp.where(pad_mask[:, :, None] > 0.5, -jnp.inf, attn)
    attn = jax.nn.softmax(attn, axis=1)
    pooled = jnp.einsum('blh,bld->bhd', attn, x)               # (B, n_head, d_in)
    res = jax.nn.sigmoid(jnp.dot(pooled, wfct) + bfc)          # (B, n_head, d_out)
    y = out[:, None, :] + res
    mean = jnp.mean(y, axis=-1, keepdims=True)
    var = jnp.mean((y - mean) ** 2, axis=-1, keepdims=True)
    yn = (y - mean) / jnp.sqrt(var + 1e-5)
    return yn * gamma + beta, attn, res


if __name__ == "__main__":
    # PIENet(n_embeds=2, d_in=32, d_out=32, d_h=32, dropout=0.0)
    B, L = 2, 8
    n_embeds, d_in, d_out, d_h = 2, 32, 32, 32

    key = jax.random.PRNGKey(0)
    k1, k2, k3, k4, k5, k6 = jax.random.split(key, 6)

    w1 = xavier_uniform(k1, (d_h, d_in))          # attention.w_1.weight
    w2 = xavier_uniform(k2, (n_embeds, d_h))      # attention.w_2.weight
    wfc = xavier_uniform(k3, (d_out, d_in))       # fc.weight
    bfc = jnp.zeros((d_out,), jnp.float32)        # fc.bias (constant 0)
    gamma = jnp.ones((d_out,), jnp.float32)       # layer_norm.weight
    beta = jnp.zeros((d_out,), jnp.float32)       # layer_norm.bias
    params = (w1.T, w2.T, wfc.T, bfc, gamma, beta)

    x = jax.random.normal(k4, (B, L, d_in), jnp.float32)
    out_in = jax.random.normal(k5, (B, d_out), jnp.float32)
    # pad mask: last 2 positions of batch element 1 are padding
    pad_mask = jnp.zeros((B, L), jnp.float32).at[1, -2:].set(1.0)

    new_out, attn, residual = jax.block_until_ready(
        pienet_forward(out_in, x, pad_mask, params))

    ref_out, ref_attn, ref_res = pienet_reference(out_in, x, pad_mask, params)
    assert jnp.allclose(new_out, ref_out, atol=1e-5, rtol=1e-5)
    assert jnp.allclose(attn, ref_attn, atol=1e-5, rtol=1e-5)
    assert jnp.allclose(residual, ref_res, atol=1e-5, rtol=1e-5)

    print("KERNEL_OK")
</pallas_src>

<mosaic_0001>
module attributes {stable_mosaic.version = 11 : i64} {
  func.func @pienet_kernel(%arg0: i32, %arg1: memref<2x32xf32, #tpu.memory_space<vmem>>, %arg2: memref<2x8x32xf32, #tpu.memory_space<vmem>>, %arg3: memref<2x8xf32, #tpu.memory_space<vmem>>, %arg4: memref<32x32xf32, #tpu.memory_space<vmem>>, %arg5: memref<32x2xf32, #tpu.memory_space<vmem>>, %arg6: memref<32x32xf32, #tpu.memory_space<vmem>>, %arg7: memref<1x32xf32, #tpu.memory_space<vmem>>, %arg8: memref<1x32xf32, #tpu.memory_space<vmem>>, %arg9: memref<1x32xf32, #tpu.memory_space<vmem>>, %arg10: memref<2x2x32xf32, #tpu.memory_space<vmem>>, %arg11: memref<2x8x2xf32, #tpu.memory_space<vmem>>, %arg12: memref<2x2x32xf32, #tpu.memory_space<vmem>>) attributes {dimension_semantics = [#tpu.dimension_semantics<parallel>], iteration_bounds = array<i64: 1>, scalar_prefetch = 0 : i64, scratch_operands = 0 : i64, tpu.core_type = #tpu.core_type<tc>, window_params = [{transform_indices = @transform_0, window_bounds = array<i64: 2, 32>}, {transform_indices = @transform_1, window_bounds = array<i64: 2, 8, 32>}, {transform_indices = @transform_2, window_bounds = array<i64: 2, 8>}, {pipeline_mode = #tpu.pipeline_mode<synchronous>, transform_indices = @transform_3, window_bounds = array<i64: 32, 32>}, {pipeline_mode = #tpu.pipeline_mode<synchronous>, transform_indices = @transform_4, window_bounds = array<i64: 32, 2>}, {pipeline_mode = #tpu.pipeline_mode<synchronous>, transform_indices = @transform_5, window_bounds = array<i64: 32, 32>}, {pipeline_mode = #tpu.pipeline_mode<synchronous>, transform_indices = @transform_6, window_bounds = array<i64: 1, 32>}, {pipeline_mode = #tpu.pipeline_mode<synchronous>, transform_indices = @transform_7, window_bounds = array<i64: 1, 32>}, {pipeline_mode = #tpu.pipeline_mode<synchronous>, transform_indices = @transform_8, window_bounds = array<i64: 1, 32>}, {transform_indices = @transform_9, window_bounds = array<i64: 2, 2, 32>}, {transform_indices = @transform_10, window_bounds = array<i64: 2, 8, 2>}, {transform_indices = @transform_11, window_bounds = array<i64: 2, 2, 32>}]} {
    %c0 = arith.constant 0 : index
    %c0_0 = arith.constant 0 : index
    %c0_1 = arith.constant 0 : index
    %0 = vector.load %arg2[%c0, %c0_0, %c0_1] : memref<2x8x32xf32, #tpu.memory_space<vmem>>, vector<2x8x32xf32>
    %1 = vector.shape_cast %0 : vector<2x8x32xf32> to vector<16x32xf32>
    %c0_2 = arith.constant 0 : index
    %c0_3 = arith.constant 0 : index
    %2 = vector.load %arg4[%c0_2, %c0_3] : memref<32x32xf32, #tpu.memory_space<vmem>>, vector<32x32xf32>
    %cst = arith.constant dense<0.000000e+00> : vector<16x32xf32>
    %3 = tpu.matmul %1, %2, %cst {dimension_numbers = #tpu.dot_dimension_numbers<[1], [0], [0], [1], [0, 0, 1, 1], [], []>} : vector<16x32xf32>, vector<32x32xf32>, vector<16x32xf32> -> vector<16x32xf32>
    %4 = math.tanh %3 : vector<16x32xf32>
    %c0_4 = arith.constant 0 : index
    %c0_5 = arith.constant 0 : index
    %5 = vector.load %arg5[%c0_4, %c0_5] : memref<32x2xf32, #tpu.memory_space<vmem>>, vector<32x2xf32>
    %cst_6 = arith.constant dense<0.000000e+00> : vector<16x2xf32>
    %6 = tpu.matmul %4, %5, %cst_6 {dimension_numbers = #tpu.dot_dimension_numbers<[1], [0], [0], [1], [0, 0, 1, 1], [], []>} : vector<16x32xf32>, vector<32x2xf32>, vector<16x2xf32> -> vector<16x2xf32>
    %7 = vector.shape_cast %6 : vector<16x2xf32> to vector<2x8x2xf32>
    %c0_7 = arith.constant 0 : index
    %c0_8 = arith.constant 0 : index
    %8 = vector.load %arg3[%c0_7, %c0_8] : memref<2x8xf32, #tpu.memory_space<vmem>>, vector<2x8xf32>
    %9 = vector.shape_cast %8 : vector<2x8xf32> to vector<2x8x1xf32>
    %cst_9 = arith.constant 5.000000e-01 : f32
    %10 = vector.broadcast %cst_9 : f32 to vector<2x8x1xf32>
    %11 = arith.cmpf ogt, %9, %10 : vector<2x8x1xf32>
    %cst_10 = arith.constant -1.000000e+30 : f32
    %12 = vector.shape_cast %11 : vector<2x8x1xi1> to vector<2x8x1xi1>
    %13 = vector.broadcast %12 : vector<2x8x1xi1> to vector<2x8x2xi1>
    %14 = vector.broadcast %cst_10 : f32 to vector<2x8x2xf32>
    %15 = arith.select %13, %14, %7 : vector<2x8x2xi1>, vector<2x8x2xf32>
    %cst_11 = arith.constant dense<0xFF800000> : vector<2x2xf32>
    %16 = vector.multi_reduction <maximumf>, %15, %cst_11 [1] : vector<2x8x2xf32> to vector<2x2xf32>
    %17 = vector.shape_cast %16 : vector<2x2xf32> to vector<2x1x2xf32>
    %18 = vector.broadcast %17 : vector<2x1x2xf32> to vector<2x8x2xf32>
    %19 = arith.subf %15, %18 : vector<2x8x2xf32>
    %20 = math.exp %19 : vector<2x8x2xf32>
    %cst_12 = arith.constant dense<0.000000e+00> : vector<2x2xf32>
    %21 = vector.multi_reduction <add>, %20, %cst_12 [1] : vector<2x8x2xf32> to vector<2x2xf32>
    %22 = vector.shape_cast %21 : vector<2x2xf32> to vector<2x1x2xf32>
    %23 = vector.broadcast %22 : vector<2x1x2xf32> to vector<2x8x2xf32>
    %24 = arith.divf %20, %23 : vector<2x8x2xf32>
    %c0_13 = arith.constant 0 : index
    %c0_14 = arith.constant 0 : index
    %c0_15 = arith.constant 0 : index
    %25 = vector.load %arg11[%c0_13, %c0_14, %c0_15] : memref<2x8x2xf32, #tpu.memory_space<vmem>>, vector<2x8x2xf32>
    tpu.vector_store %arg11[%c0_13, %c0_14, %c0_15], %24 {strides = array<i32>} : memref<2x8x2xf32, #tpu.memory_space<vmem>>, vector<2x8x2xf32>,
    "tpu.trace_start"() <{level = 10 : i32, message = "blh,bld->bhd"}> : () -> ()
    %cst_16 = arith.constant dense<0.000000e+00> : vector<2x2x32xf32>
    %26 = tpu.matmul %24, %0, %cst_16 {dimension_numbers = #tpu.dot_dimension_numbers<[1], [1], [2], [2], [0, 0, 0, 2, 1, 2], [0], [0]>} : vector<2x8x2xf32>, vector<2x8x32xf32>, vector<2x2x32xf32> -> vector<2x2x32xf32>
    "tpu.trace_stop"() : () -> ()
    %27 = vector.shape_cast %26 : vector<2x2x32xf32> to vector<4x32xf32>
    %c0_17 = arith.constant 0 : index
    %c0_18 = arith.constant 0 : index
    %28 = vector.load %arg6[%c0_17, %c0_18] : memref<32x32xf32, #tpu.memory_space<vmem>>, vector<32x32xf32>
    %cst_19 = arith.constant dense<0.000000e+00> : vector<4x32xf32>
    %29 = tpu.matmul %27, %28, %cst_19 {dimension_numbers = #tpu.dot_dimension_numbers<[1], [0], [0], [1], [0, 0, 1, 1], [], []>} : vector<4x32xf32>, vector<32x32xf32>, vector<4x32xf32> -> vector<4x32xf32>
    %c0_20 = arith.constant 0 : index
    %c0_21 = arith.constant 0 : index
    %30 = vector.load %arg7[%c0_20, %c0_21] : memref<1x32xf32, #tpu.memory_space<vmem>>, vector<1x32xf32>
    %31 = vector.broadcast %30 : vector<1x32xf32> to vector<4x32xf32>
    %32 = arith.addf %29, %31 : vector<4x32xf32>
    %33 = arith.negf %32 : vector<4x32xf32>
    %34 = math.exp %33 : vector<4x32xf32>
    %cst_22 = arith.constant 1.000000e+00 : f32
    %35 = vector.broadcast %cst_22 : f32 to vector<4x32xf32>
    %36 = arith.addf %35, %34 : vector<4x32xf32>
    %37 = arith.divf %35, %36 : vector<4x32xf32>
    %38 = vector.shape_cast %37 : vector<4x32xf32> to vector<2x2x32xf32>
    %c0_23 = arith.constant 0 : index
    %c0_24 = arith.constant 0 : index
    %c0_25 = arith.constant 0 : index
    %39 = vector.load %arg12[%c0_23, %c0_24, %c0_25] : memref<2x2x32xf32, #tpu.memory_space<vmem>>, vector<2x2x32xf32>
    tpu.vector_store %arg12[%c0_23, %c0_24, %c0_25], %38 {strides = array<i32>} : memref<2x2x32xf32, #tpu.memory_space<vmem>>, vector<2x2x32xf32>,
    %c0_26 = arith.constant 0 : index
    %c0_27 = arith.constant 0 : index
    %40 = vector.load %arg1[%c0_26, %c0_27] : memref<2x32xf32, #tpu.memory_space<vmem>>, vector<2x32xf32>
    %41 = vector.shape_cast %40 : vector<2x32xf32> to vector<2x1x32xf32>
    %42 = vector.broadcast %41 : vector<2x1x32xf32> to vector<2x2x32xf32>
    %43 = arith.addf %42, %38 : vector<2x2x32xf32>
    %cst_28 = arith.constant dense<0.000000e+00> : vector<2x2xf32>
    %44 = vector.multi_reduction <add>, %43, %cst_28 [2] : vector<2x2x32xf32> to vector<2x2xf32>
    %45 = vector.shape_cast %44 : vector<2x2xf32> to vector<2x2x1xf32>
    %cst_29 = arith.constant 3.200000e+01 : f32
    %46 = vector.broadcast %cst_29 : f32 to vector<2x2x1xf32>
    %47 = arith.divf %45, %46 : vector<2x2x1xf32>
    %48 = vector.broadcast %47 : vector<2x2x1xf32> to vector<2x2x32xf32>
    %49 = arith.subf %43, %48 : vector<2x2x32xf32>
    %50 = arith.mulf %49, %49 : vector<2x2x32xf32>
    %cst_30 = arith.constant dense<0.000000e+00> : vector<2x2xf32>
    %51 = vector.multi_reduction <add>, %50, %cst_30 [2] : vector<2x2x32xf32> to vector<2x2xf32>
    %52 = vector.shape_cast %51 : vector<2x2xf32> to vector<2x2x1xf32>
    %cst_31 = arith.constant 3.200000e+01 : f32
    %53 = vector.broadcast %cst_31 : f32 to vector<2x2x1xf32>
    %54 = arith.divf %52, %53 : vector<2x2x1xf32>
    %55 = vector.broadcast %47 : vector<2x2x1xf32> to vector<2x2x32xf32>
    %56 = arith.subf %43, %55 : vector<2x2x32xf32>
    %cst_32 = arith.constant 9.99999974E-6 : f32
    %57 = vector.broadcast %cst_32 : f32 to vector<2x2x1xf32>
    %58 = arith.addf %54, %57 : vector<2x2x1xf32>
    %59 = math.rsqrt %58 : vector<2x2x1xf32>
    %60 = vector.broadcast %59 : vector<2x2x1xf32> to vector<2x2x32xf32>
    %61 = arith.mulf %56, %60 : vector<2x2x32xf32>
    %c0_33 = arith.constant 0 : index
    %c0_34 = arith.constant 0 : index
    %62 = vector.load %arg8[%c0_33, %c0_34] : memref<1x32xf32, #tpu.memory_space<vmem>>, vector<1x32xf32>
    %63 = vector.shape_cast %62 : vector<1x32xf32> to vector<1x1x32xf32>
    %64 = vector.broadcast %63 : vector<1x1x32xf32> to vector<2x2x32xf32>
    %65 = arith.mulf %61, %64 : vector<2x2x32xf32>
    %c0_35 = arith.constant 0 : index
    %c0_36 = arith.constant 0 : index
    %66 = vector.load %arg9[%c0_35, %c0_36] : memref<1x32xf32, #tpu.memory_space<vmem>>, vector<1x32xf32>
    %67 = vector.shape_cast %66 : vector<1x32xf32> to vector<1x1x32xf32>
    %68 = vector.broadcast %67 : vector<1x1x32xf32> to vector<2x2x32xf32>
    %69 = arith.addf %65, %68 : vector<2x2x32xf32>
    %c0_37 = arith.constant 0 : index
    %c0_38 = arith.constant 0 : index
    %c0_39 = arith.constant 0 : index
    %70 = vector.load %arg10[%c0_37, %c0_38, %c0_39] : memref<2x2x32xf32, #tpu.memory_space<vmem>>, vector<2x2x32xf32>
    tpu.vector_store %arg10[%c0_37, %c0_38, %c0_39], %69 {strides = array<i32>} : memref<2x2x32xf32, #tpu.memory_space<vmem>>, vector<2x2x32xf32>,
    return
  }
  func.func @transform_0(%arg0: i32) -> (i32, i32) {
    %c0_i32 = arith.constant 0 : i32
    %c0_i32_0 = arith.constant 0 : i32
    return %arg0, %c0_i32 : i32, i32
  }
  func.func @transform_1(%arg0: i32) -> (i32, i32, i32) {
    %c0_i32 = arith.constant 0 : i32
    %c0_i32_0 = arith.constant 0 : i32
    %c0_i32_1 = arith.constant 0 : i32
    return %arg0, %c0_i32, %c0_i32_0 : i32, i32, i32
  }
  func.func @transform_2(%arg0: i32) -> (i32, i32) {
    %c0_i32 = arith.constant 0 : i32
    %c0_i32_0 = arith.constant 0 : i32
    return %arg0, %c0_i32 : i32, i32
  }
  func.func @transform_3(%arg0: i32) -> (i32, i32) {
    %c0_i32 = arith.constant 0 : i32
    %c0_i32_0 = arith.constant 0 : i32
    %c0_i32_1 = arith.constant 0 : i32
    return %c0_i32, %c0_i32_0 : i32, i32
  }
  func.func @transform_4(%arg0: i32) -> (i32, i32) {
    %c0_i32 = arith.constant 0 : i32
    %c0_i32_0 = arith.constant 0 : i32
    %c0_i32_1 = arith.constant 0 : i32
    return %c0_i32, %c0_i32_0 : i32, i32
  }
  func.func @transform_5(%arg0: i32) -> (i32, i32) {
    %c0_i32 = arith.constant 0 : i32
    %c0_i32_0 = arith.constant 0 : i32
    %c0_i32_1 = arith.constant 0 : i32
    return %c0_i32, %c0_i32_0 : i32, i32
  }
  func.func @transform_6(%arg0: i32) -> (i32, i32) {
    %c0_i32 = arith.constant 0 : i32
    %c0_i32_0 = arith.constant 0 : i32
    %c0_i32_1 = arith.constant 0 : i32
    return %c0_i32, %c0_i32_0 : i32, i32
  }
  func.func @transform_7(%arg0: i32) -> (i32, i32) {
    %c0_i32 = arith.constant 0 : i32
    %c0_i32_0 = arith.constant 0 : i32
    %c0_i32_1 = arith.constant 0 : i32
    return %c0_i32, %c0_i32_0 : i32, i32
  }
  func.func @transform_8(%arg0: i32) -> (i32, i32) {
    %c0_i32 = arith.constant 0 : i32
    %c0_i32_0 = arith.constant 0 : i32
    %c0_i32_1 = arith.constant 0 : i32
    return %c0_i32, %c0_i32_0 : i32, i32
  }
  func.func @transform_9(%arg0: i32) -> (i32, i32, i32) {
    %c0_i32 = arith.constant 0 : i32
    %c0_i32_0 = arith.constant 0 : i32
    %c0_i32_1 = arith.constant 0 : i32
    return %arg0, %c0_i32, %c0_i32_0 : i32, i32, i32
  }
  func.func @transform_10(%arg0: i32) -> (i32, i32, i32) {
    %c0_i32 = arith.constant 0 : i32
    %c0_i32_0 = arith.constant 0 : i32
    %c0_i32_1 = arith.constant 0 : i32
    return %arg0, %c0_i32, %c0_i32_0 : i32, i32, i32
  }
  func.func @transform_11(%arg0: i32) -> (i32, i32, i32) {
    %c0_i32 = arith.constant 0 : i32
    %c0_i32_0 = arith.constant 0 : i32
    %c0_i32_1 = arith.constant 0 : i32
    return %arg0, %c0_i32, %c0_i32_0 : i32, i32, i32
  }
}

</mosaic_0001>

<bundles_post_ra>
// kernel: tpu_custom_call.1
= control target key start
LH: loop header
LB: loop body
LE: loop exit
PB: predicated region body
PF: predicated region fallthrough
CT: control target
= control target key end

     0   :  { %17 = vsyncpa [#allocation3], 0  ;;  %s1190_s0 = inlined_call_operand.vmem [shape: f32[2,32], index: 0, kind: input, shape index: {}]   ;;  %s1191_s1 = inlined_call_operand.hbm [shape: f32[2,8,32], index: 1, kind: input, shape index: {}]   ;;  %s1192_s2 = inlined_call_operand.vmem [shape: f32[2,8], index: 2, kind: input, shape index: {}]   ;;  %s1193_s3 = inlined_call_operand.vmem [shape: f32[32,32], index: 3, kind: input, shape index: {}]   ;;  %s1194_s4 = inlined_call_operand.vmem [shape: f32[32,2], index: 4, kind: input, shape index: {}]   ;;  %s1195_s5 = inlined_call_operand.hbm [shape: f32[32,32], index: 5, kind: input, shape index: {}]   ;;  %s1196_s6 = inlined_call_operand.vmem [shape: f32[1,32], index: 6, kind: input, shape index: {}]   ;;  %s1197_s7 = inlined_call_operand.vmem [shape: f32[1,32], index: 7, kind: input, shape index: {}]   ;;  %s1198_s8 = inlined_call_operand.vmem [shape: f32[1,32], index: 8, kind: input, shape index: {}]   ;;  %s1199_s9 = inlined_call_operand.hbm [shape: f32[2,2,32], index: 9, kind: output, shape index: {0}]   ;;  %s1200_s10 = inlined_call_operand.vmem [shape: f32[2,8,2], index: 10, kind: output, shape index: {1}]   ;;  %s1201_s11 = inlined_call_operand.hbm [shape: f32[2,2,32], index: 11, kind: output, shape index: {2}]  }
   0x1   :  { %18 = vsyncpa [#allocation6], 0 }
   0x2   :  { %19 = vsyncpa [#allocation4], 0 }
   0x3   :  { %20 = vsyncpa [#allocation9], 0  ;;  %s976_s17 = smov [#allocation2]   ;;  %s880_s21 = scalar_lea.hbm %s1191_s1, 256 }
   0x4   :  { %s28_s18 = sshll.u32 %s976_s17, 4  ;;  %p881_p0 = scmp.ne.s32.totalorder %s1191_s1, %s880_s21  ;;  %s29_s18 = int_to_ptr.vmem [resolvable:$true] %s28_s18 }
   0x5   :  { %p884_p1 = scmp.lt.u32.totalorder %s880_s21, %s1191_s1 }
   0x7   :  { %p886_p2 = pnand %p884_p1, %p881_p0 }
   0x9   :  { %889 = shalt.err (!%p886_p2)
}
   0xa   :  { %s890_s26 = scalar_lea.vmem %s29_s18, 256  ;;  %p895_p4 = scmp.lt.s32.totalorder %s29_s18, %s29_s18 }
   0xb   :  { %p891_p3 = scmp.ne.s32.totalorder %s29_s18, %s890_s26  ;;  %p896_p5 = scmp.lt.s32.totalorder %s890_s26, %s890_s26 }
   0xd   :  { %p897_p6 = por %p896_p5, %p895_p4 }
   0xf   :  { %p898_p7 = pnand %p897_p6, %p891_p3 }
  0x11   :  { %901 = shalt.err (!%p898_p7)
}
  0x12   :  { %s977_s27 = smov 128   ;;  %s978_s28 = smov 8  }
  0x13   :  { %34 = dma.hbm_to_vmem [thread:$0]  %s1191_s1, 256, %s29_s18, [#allocation3], %s977_s27, %s977_s27, %s978_s28  }
  0x14   :  { %s979_s12 = smov [#allocation5]   ;;  %s902_s16 = scalar_lea.hbm %s1195_s5, 512 }
  0x15   :  { %s46_s13 = sshll.u32 %s979_s12, 4  ;;  %p903_p8 = scmp.ne.s32.totalorder %s1195_s5, %s902_s16  ;;  %s47_s13 = int_to_ptr.vmem [resolvable:$true] %s46_s13 }
  0x16   :  { %p906_p9 = scmp.lt.u32.totalorder %s902_s16, %s1195_s5 }
  0x18   :  { %p908_p10 = pnand %p906_p9, %p903_p8 }
  0x1a   :  { %911 = shalt.err (!%p908_p10)
}
  0x1b   :  { %s912_s22 = scalar_lea.vmem %s47_s13, 512  ;;  %p917_p12 = scmp.lt.s32.totalorder %s47_s13, %s47_s13 }
  0x1c   :  { %p913_p11 = scmp.ne.s32.totalorder %s47_s13, %s912_s22  ;;  %p918_p13 = scmp.lt.s32.totalorder %s912_s22, %s912_s22 }
  0x1e   :  { %p919_p0 = por %p918_p13, %p917_p12 }
  0x20   :  { %p920_p1 = pnand %p919_p0, %p913_p11 }
  0x22   :  { %923 = shalt.err (!%p920_p1)
}
  0x23   :  { %52 = dma.hbm_to_vmem [thread:$0]  %s1195_s5, 512, %s47_s13, [#allocation6], %s977_s27, %s977_s27, %s978_s28  }
  0x24   :  { %968 = dma.done.wait [#allocation3], 256  }
  0x25   :  { %969 = vsyncadd [#allocation3], 4294967040 }
  0x26   :  { %970 = dma.done.wait [#allocation6], 512  }
  0x27   :  { %971 = vsyncadd [#allocation6], 4294966784  ;;  %vm71_vm0 = vcmask 261120   ;;  %v67_v0 = vld [vmem:[%s1193_s3] sm:$0xff]  ;;  %v68_v1 = vld [vmem:[%s1193_s3 + $0x8] sm:$0xff]  ;;  %v241_v14 = vlaneseq  ;;  %v980_v25 = vmov 0.0  }
  0x28   :  { %v69_v2 = vld [vmem:[%s1193_s3 + $0x10] sm:$0xff]  ;;  %v825_v3 = vpack.c.bf16 %v68_v1, %v67_v0  ;;  %v70_v4 = vld [vmem:[%s1193_s3 + $0x18] sm:$0xff]  ;;  %v65_v5 = vld [vmem:[#allocation2] sm:$0xff]  ;;  %vm981_vm1 = vmmov 0   ;;  %vm263_vm4 = vcmask 15360   ;;  %vm336_vm5 = vcmask 64512  }
  0x29   :  { %v829_v6 = vpack.c.bf16 %v70_v4, %v69_v2  ;;  %790 = vmatprep.mubr.msk.f32.mxu0 %vm71_vm0, %v65_v5  ;;  %v1086_v7 = vld [vmem:[#allocation2 + $0x8] sm:$0xff]  ;;  %v155_v8 = vld [vmem:[%s1194_s4] sm:$0xff]  ;;  %v157_v10 = vld [vmem:[%s1194_s4 + $0x10] sm:$0xff]  ;;  %v1102_v15 = vshrl.u32 %v241_v14, 7  ;;  %vm625_vm6 = vcmask 254976  }
  0x2a   :  { %826 = vmatprep.subr.bf16.mxu0 %v825_v3  ;;  %v156_v9 = vld [vmem:[%s1194_s4 + $0x8] sm:$0xff]  ;;  %v158_v12 = vld [vmem:[%s1194_s4 + $0x18] sm:$0xff]  ;;  %v240_v16 = vld [vmem:[%s1192_s2] sm:$0x3] }
  0x2b   :  { %828 = vmatpush3.bf16.msra.mxu0 %v825_v3  ;;  %v833_v11 = vpack.c.bf16 %v156_v9, %v155_v8  ;;  %v837_v13 = vpack.c.bf16 %v158_v12, %v157_v10  ;;  %v1108_v17 = vsub.s32 0, %v1102_v15  ;;  %v250_v18 = vsub.s32 1, %v1102_v15  ;;  %v515_v9 = vld [vmem:[#allocation5] sm:$0xff]  ;;  %v516_v10 = vld [vmem:[#allocation5 + $0x8] sm:$0xff]  ;;  %v518_v14 = vld [vmem:[#allocation5 + $0x18] sm:$0xff] }
  0x2c   :  { %830 = vmatprep.subr.bf16.mxu0 %v829_v6  ;;  %v982_v12 = vmov 0.0|0.0  }
  0x2d   :  { %834 = vmatprep.subr.bf16.mxu1 %v833_v11  ;;  %v244_v19 = vrot.slane %v240_v16, %v1108_v17  ;;  %v251_v20 = vrot.slane %v240_v16, %v250_v18  ;;  %v983_v18 = vmov 1983009808  }
  0x2e   :  { %836 = vmatpush3.bf16.msra.mxu1 %v833_v11  ;;  %v842_v11 = vpack.c.bf16 %v516_v10, %v515_v9 }
  0x2f   :  { %832 = vmatpush3.bf16.msra.mxu0 %v829_v6  ;;  %838 = vmatprep.subr.bf16.mxu1 %v837_v13 }
  0x30   :  { %246 = vbcast.lane.b32.xlu0 %v244_v19, 256  ;;  %841 = vmatprep.subr.bf16.mxu0 %v982_v12  ;;  %v530_v19 = vunpack.c.l.s4 %v983_v18 }
  0x32   :  { %791 = vmatmul.mubr.msk.f32.vlgmr.msra.gmra.mrb[0].mxu0 %vm71_vm0, %v1086_v7  ;;  %840 = vmatpush3.bf16.msra.mxu1 %v837_v13  ;;  %v517_v13 = vld [vmem:[#allocation5 + $0x10] sm:$0xff] }
  0x33   :  { %804 = vmatprep.subr.mxu1 %v980_v25  ;;  %822 = vmatprep.mubr.msk.f32.mxu0 %vm981_vm1, %v980_v25  ;;  %v845_v16 = vpack.c.bf16 %v518_v14, %v517_v13 }
  0x34   :  { %253 = vbcast.lane.b32.xlu0 %v251_v20, 256  ;;  %843 = vmatpush3.bf16.msra.mxu0 %v842_v11  ;;  %v531_v20 = vunpack.c.0.s8 %v530_v19 }
  0x35   :  { %844 = vmatprep.subr.bf16.mxu0 %v982_v12 }
  0x38   :  { %846 = vmatpush3.bf16.msra.mxu0 %v845_v16 }
  0xa2   :  { %v247_v26 = vpop.permute.xlu0 %246 }
  0xa3   :  { %vm255_vm3 = vcmp.gt.f32.partialorder %v247_v26, 0.5 }
  0xa6   :  { %v254_v27 = vpop.permute.xlu0 %253 }
  0xa7   :  { %vm256_vm2 = vcmp.gt.f32.partialorder %v254_v27, 0.5  ;;  %v755_v27 = vld [vmem:[%s1196_s6] ss:$0 sm:$0xff] }
 0x105   :  { %v792_v21 = vpop.f32.mrb[0].mxu0 }
 0x106   :  { %v144_v22 = vpop.f32.mrb[1].mxu0 }
 0x107   :  { %860 = vtanh.f32 %v144_v22  ;;  %v534_v22 = vsub.s32 %v531_v20, %v1102_v15 }
 0x108   :  { %862 = vtanh.f32 %v792_v21 }
 0x111   :  { %v861_v23 = vpop.eup %860 }
 0x112   :  { %v863_v24 = vpop.eup %862  ;;  %801 = vmatprep.mubr.msk.f32.mxu1 %vm71_vm0, %v861_v23 }
 0x113   :  { %802 = vmatmul.mubr.msk.f32.vlgmr.msra.gmra.mrb[0].mxu1 %vm71_vm0, %v863_v24 }
 0x114   :  { %806 = vmatprep.mubr.msk.f32.mxu1 %vm981_vm1, %v980_v25  ;;  %805 = vmatpush3.msra.mxu1 %v65_v5 }
 0x115   :  { %809 = vmatprep.subr.mxu1 %v980_v25 }
 0x1e6   :  { %v803_v28 = vpop.f32.mrb[0].mxu1 }
 0x1e7   :  { %v262_v29 = vsel %vm256_vm2, -1e+30, %v803_v28  ;;  %v231_v30 = vpop.f32.mrb[1].mxu1 }
 0x1e8   :  { %v271_v31 = vsel %vm263_vm4, %v262_v29, -inf  ;;  %v261_v32 = vsel %vm255_vm3, -1e+30, %v231_v30 }
 0x1e9   :  { %v272_v33 = vrot.slane %v271_v31, 4  ;;  %v264_v34 = vsel %vm263_vm4, %v261_v32, -inf }
 0x1ea   :  { %v265_v35 = vrot.slane %v264_v34, 4 }
 0x1eb   :  { %v273_v36 = vmax.f32 %v271_v31, %v272_v33 }
 0x1ec   :  { %v266_v37 = vmax.f32 %v264_v34, %v265_v35 }
 0x1ed   :  { %v274_v38 = vrot.slane %v273_v36, 2 }
 0x1ee   :  { %v267_v39 = vrot.slane %v266_v37, 2 }
 0x1ef   :  { %v275_v40 = vmax.f32 %v273_v36, %v274_v38 }
 0x1f0   :  { %v268_v41 = vmax.f32 %v266_v37, %v267_v39  ;;  %v758_v37 = vld.sshfl [vmem:[%s1190_s0] sm:$0x11 pattern:$0x75316420]  ;;  %s985_s0 = smov [#allocation8]  }
 0x1f1   :  { %v276_v42 = vrot.slane %v275_v40, 1  ;;  %v637_v39 = vcombine.high %v758_v37, %v758_v37  ;;  %s730_s6 = sshll.u32 %s985_s0, 4  ;;  %s731_s6 = int_to_ptr.vmem [resolvable:$true] %s730_s6 }
 0x1f2   :  { %v269_v43 = vrot.slane %v268_v41, 1  ;;  %s924_s24 = scalar_lea.vmem %s731_s6, 64  ;;  %p929_p3 = scmp.lt.s32.totalorder %s731_s6, %s731_s6 }
 0x1f3   :  { %v277_v44 = vmax.f32 %v275_v40, %v276_v42  ;;  %p925_p2 = scmp.ne.s32.totalorder %s731_s6, %s924_s24  ;;  %p930_p4 = scmp.lt.s32.totalorder %s924_s24, %s924_s24 }
 0x1f4   :  { %v270_v45 = vmax.f32 %v268_v41, %v269_v43 }
 0x1f5   :  { %v279_v46 = vsub.f32 %v262_v29, %v277_v44  ;;  %p931_p5 = por %p930_p4, %p929_p3 }
 0x1f6   :  { %v278_v47 = vsub.f32 %v261_v32, %v270_v45  ;;  %v984_v32 = vmov 1966171168  }
 0x1f7   :  { %v282_v48 = vmul.f32 1.442695, %v279_v46  ;;  %v639_v33 = vunpack.c.l.s4 %v984_v32  ;;  %p932_p6 = pnand %p931_p5, %p925_p2 }
 0x1f8   :  { %v280_v49 = vmul.f32 1.442695, %v278_v47 }
 0x1f9   :  { %864 = vpow2.f32 %v282_v48  ;;  %v640_v35 = vunpack.c.0.s8 %v639_v33 }
 0x1fa   :  { %866 = vpow2.f32 %v280_v49 }
 0x1fb   :  { %v643_v38 = vsub.s32 %v640_v35, %v1102_v15 }
 0x1fd   :  { %v644_v40 = vrot.slane %v758_v37, %v643_v38  ;;  %v651_v41 = vrot.slane %v637_v39, %v643_v38 }
 0x1ff   :  { %v655_v42 = vrot.slane %v644_v40, %v1108_v17  ;;  %v659_v45 = vrot.slane %v651_v41, %v1108_v17 }
 0x203   :  { %v865_v50 = vpop.eup %864 }
 0x204   :  { %v867_v51 = vpop.eup %866  ;;  %v291_v52 = vsel %vm263_vm4, %v865_v50, 0.0 }
 0x205   :  { %v292_v53 = vrot.slane %v291_v52, 4  ;;  %v284_v54 = vsel %vm263_vm4, %v867_v51, 0.0 }
 0x206   :  { %v285_v55 = vrot.slane %v284_v54, 4 }
 0x207   :  { %v293_v56 = vadd.f32 %v292_v53, %v291_v52 }
 0x208   :  { %v286_v57 = vadd.f32 %v285_v55, %v284_v54 }
 0x209   :  { %v294_v58 = vrot.slane %v293_v56, 2 }
 0x20a   :  { %v287_v59 = vrot.slane %v286_v57, 2 }
 0x20b   :  { %v295_v60 = vadd.f32 %v294_v58, %v293_v56 }
 0x20c   :  { %v288_v61 = vadd.f32 %v287_v59, %v286_v57 }
 0x20d   :  { %v296_v62 = vrot.slane %v295_v60, 1 }
 0x20e   :  { %v289_v63 = vrot.slane %v288_v61, 1 }
 0x20f   :  { %v297_v0 = vadd.f32 %v296_v62, %v295_v60 }
 0x210   :  { %v290_v1 = vadd.f32 %v289_v63, %v288_v61 }
 0x211   :  { %868 = vrcp.f32 %v297_v0 }
 0x212   :  { %870 = vrcp.f32 %v290_v1 }
 0x21b   :  { %v869_v2 = vpop.eup %868 }
 0x21c   :  { %v871_v3 = vpop.eup %870  ;;  %v301_v4 = vmul.f32 %v869_v2, %v865_v50 }
 0x21d   :  { %v299_v5 = vmul.f32 %v871_v3, %v867_v51 }
 0x21e   :  { %303 = vst.msk [vmem:[%s1200_s10 + $0x8] sm:$0xff] %vm263_vm4, %v301_v4 }
 0x21f   :  { %304 = vxpose.xlu1.b32.start.end [1/1] (short) (narrow) %v299_v5, 8  ;;  %302 = vst.msk [vmem:[%s1200_s10] sm:$0xff] %vm263_vm4, %v299_v5 }
 0x223   :  { %410 = vxpose.xlu1.b32.start.end [1/1] (short) (narrow) %v301_v4, 8 }
 0x29f   :  { %v320_v6 = vpop.trf.xlu1 }
 0x2a0   :  { %807 = vmatmul.mubr.msk.f32.vlgmr.msra.gmra.mrb[2].mxu1 %vm336_vm5, %v320_v6 }
 0x2a1   :  { %810 = vmatpush3.msra.mxu1 %v1086_v7  ;;  %811 = vmatprep.mubr.msk.f32.mxu1 %vm981_vm1, %v980_v25 }
 0x2a3   :  { %v426_v8 = vpop.trf.xlu1 }
 0x2a4   :  { %812 = vmatmul.mubr.msk.f32.vlgmr.msra.gmra.mrb[4].mxu1 %vm336_vm5, %v426_v8 }
 0x373   :  { %v406_v7 = vpop.f32.mrb[2].mxu1 }
 0x374   :  { %v808_v21 = vpop.f32.mrb[3].mxu1 }
 0x377   :  { %v511_v23 = vpop.f32.mrb[4].mxu1 }
 0x378   :  { %v528_v24 = vcombine.low %v406_v7, %v511_v23  ;;  %v813_v25 = vpop.f32.mrb[5].mxu1 }
 0x37a   :  { %v535_v26 = vrot.slane %v528_v24, %v534_v22 }
 0x37c   :  { %823 = vmatmul.mubr.msk.f32.vlgmr.msra.gmra.mrb[2].mxu0 %vm71_vm0, %v535_v26 }
 0x44f   :  { %v604_v28 = vpop.f32.mrb[2].mxu0 }
 0x450   :  { %v605_v29 = vadd.f32 %v755_v27, %v604_v28  ;;  %v824_v30 = vpop.f32.mrb[3].mxu0 }
 0x452   :  { %v757_v31 = vmul.f32 -1.442695, %v605_v29 }
 0x454   :  { %872 = vpow2.f32 %v757_v31 }
 0x45e   :  { %v873_v34 = vpop.eup %872 }
 0x45f   :  { %v611_v36 = vadd.f32 1.0, %v873_v34 }
 0x461   :  { %874 = vrcp.f32 %v611_v36 }
 0x46b   :  { %v875_v43 = vpop.eup %874 }
 0x46c   :  { %v621_v44 = vrot.slane %v875_v43, %v534_v22 }
 0x46e   :  { %v662_v46 = vadd.f32 %v655_v42, %v621_v44  ;;  %626 = vst.msk [vmem:[#allocation8] sm:$0x3] %vm625_vm6, %v621_v44  ;;  %v622_v47 = vcombine.high %v621_v44, %v621_v44 }
 0x470   :  { %v664_v48 = vsel %vm625_vm6, %v662_v46, 0.0  ;;  %v663_v49 = vadd.f32 %v659_v45, %v622_v47  ;;  %627 = vst.msk [vmem:[#allocation8 + $0x2] sm:$0x3] %vm625_vm6, %v622_v47 }
 0x471   :  { %665 = vadd.xlane.f32.xlu0 %v664_v48 }
 0x472   :  { %v667_v15 = vsel %vm625_vm6, %v663_v49, 0.0 }
 0x473   :  { %668 = vadd.xlane.f32.xlu1 %v667_v15 }
 0x4fe   :  { %v666_v50 = vpop.xlane.xlu0 %665 }
 0x4ff   :  { %v671_v51 = vmul.f32 0.03125, %v666_v50 }
 0x500   :  { %v669_v52 = vpop.xlane.xlu1 %668 }
 0x501   :  { %v673_v53 = vsub.f32 %v662_v46, %v671_v51  ;;  %v672_v54 = vmul.f32 0.03125, %v669_v52 }
 0x503   :  { %v674_v55 = vsub.f32 %v663_v49, %v672_v54  ;;  %v675_v17 = vmul.f32 %v673_v53, %v673_v53 }
 0x505   :  { %v677_v56 = vsel %vm625_vm6, %v675_v17, 0.0  ;;  %v676_v57 = vmul.f32 %v674_v55, %v674_v55 }
 0x506   :  { %678 = vadd.xlane.f32.xlu0 %v677_v56 }
 0x507   :  { %v680_v58 = vsel %vm625_vm6, %v676_v57, 0.0 }
 0x50a   :  { %681 = vadd.xlane.f32.xlu0 %v680_v58 }
 0x50b   :  { %935 = shalt.err (!%p932_p6)
}
 0x50c   :  { %s936_s29 = scalar_lea.hbm %s1201_s11, 64 }
 0x50d   :  { %p937_p7 = scmp.ne.s32.totalorder %s1201_s11, %s936_s29  ;;  %p940_p8 = scmp.lt.u32.totalorder %s936_s29, %s1201_s11 }
 0x50f   :  { %p942_p9 = pnand %p940_p8, %p937_p7 }
 0x511   :  { %945 = shalt.err (!%p942_p9)
}
 0x512   :  { %s986_s28 = smov 32   ;;  %s987_s13 = smov 2   ;;  %v759_v2 = vld [vmem:[%s1197_s7] ss:$0 sm:$0xff] }
 0x513   :  { %736 = dma.vmem_to_hbm [thread:$0]  %s731_s6, 64, %s1201_s11, [#allocation9], %s986_s28, %s986_s28, %s987_s13  }
 0x514   :  { %v760_v4 = vld [vmem:[%s1198_s8] ss:$0 sm:$0xff]  ;;  %s988_s11 = smov [#allocation7]  }
 0x515   :  { %s716_s20 = sshll.u32 %s988_s11, 4  ;;  %s717_s20 = int_to_ptr.vmem [resolvable:$true] %s716_s20 }
 0x516   :  { %s946_s2 = scalar_lea.vmem %s717_s20, 64  ;;  %p951_p11 = scmp.lt.s32.totalorder %s717_s20, %s717_s20 }
 0x517   :  { %p947_p10 = scmp.ne.s32.totalorder %s717_s20, %s946_s2  ;;  %p952_p12 = scmp.lt.s32.totalorder %s946_s2, %s946_s2 }
 0x519   :  { %p953_p13 = por %p952_p12, %p951_p11 }
 0x51b   :  { %p954_p0 = pnand %p953_p13, %p947_p10 }
 0x593   :  { %v679_v59 = vpop.xlane.xlu0 %678 }
 0x594   :  { %v683_v60 = vmul.f32 0.03125, %v679_v59 }
 0x596   :  { %v685_v61 = vadd.f32 1e-05, %v683_v60 }
 0x597   :  { %v682_v62 = vpop.xlane.xlu0 %681 }
 0x598   :  { %876 = vrsqrt.f32 %v685_v61  ;;  %v684_v63 = vmul.f32 0.03125, %v682_v62 }
 0x59a   :  { %v686_v0 = vadd.f32 1e-05, %v684_v63 }
 0x59c   :  { %878 = vrsqrt.f32 %v686_v0 }
 0x5a2   :  { %v877_v1 = vpop.eup %876 }
 0x5a3   :  { %v689_v3 = vmul.f32 %v877_v1, %v673_v53 }
 0x5a5   :  { %v698_v5 = vmul.f32 %v759_v2, %v689_v3 }
 0x5a6   :  { %v879_v6 = vpop.eup %878 }
 0x5a7   :  { %v690_v8 = vmul.f32 %v879_v6, %v674_v55  ;;  %v707_v9 = vadd.f32 %v760_v4, %v698_v5 }
 0x5a9   :  { %v699_v10 = vmul.f32 %v759_v2, %v690_v8  ;;  %709 = vst.msk [vmem:[#allocation7] sm:$0x3] %vm625_vm6, %v707_v9 }
 0x5ab   :  { %v708_v11 = vadd.f32 %v760_v4, %v699_v10 }
 0x5ad   :  { %710 = vst.msk [vmem:[#allocation7 + $0x2] sm:$0x3] %vm625_vm6, %v708_v11 }
 0x5ae   :  { %957 = shalt.err (!%p954_p0)
}
 0x5af   :  { %s958_s4 = scalar_lea.hbm %s1199_s9, 64 }
 0x5b0   :  { %p959_p1 = scmp.ne.s32.totalorder %s1199_s9, %s958_s4  ;;  %p962_p2 = scmp.lt.u32.totalorder %s958_s4, %s1199_s9 }
 0x5b2   :  { %p964_p3 = pnand %p962_p2, %p959_p1 }
 0x5b4   :  { %967 = shalt.err (!%p964_p3)
}
 0x5b5   :  { %722 = dma.vmem_to_hbm [thread:$0]  %s717_s20, 64, %s1199_s9, [#allocation4], %s986_s28, %s986_s28, %s987_s13  }
 0x5b6   :  { %972 = dma.done.wait [#allocation4], 64  }
 0x5b7   :  { %973 = vsyncadd [#allocation4], 4294967232 }
 0x5b8   :  { %974 = dma.done.wait [#allocation9], 64  }
 0x5b9   :  { %975 = vsyncadd [#allocation9], 4294967232 }
 0x5ba   :  { %745 = vsyncpa [#allocation3], 1 }
 0x5bb   :  { %746 = vsyncpa [#allocation6], 1 }
 0x5bc   :  { %747 = vsyncpa [#allocation4], 1 }
 0x5bd   :  { %748 = vsyncpa [#allocation9], 1 }

</bundles_post_ra>
